<compile_context>
chip_gen: v7x
topology: tpu7x:2x2x1
jax: 0.10.0
libtpu: 0.0.40
codegen_flags: <defaults>
</compile_context>

<pallas_src>
import jax
import jax.numpy as jnp
from jax.experimental import pallas as pl
from jax.experimental.pallas import tpu as pltpu


def addmm_cat_kernel(x_ref, a_ref, b_ref, o_ref, acc_ref):
    k = pl.program_id(2)

    # Fold the bias into the accumulator init (one less full-tile add + store).
    @pl.when(k == 0)
    def _():
        acc_ref[...] = x_ref[...].astype(jnp.float32)

    # MXU matmul, accumulate in f32.
    acc_ref[...] += jnp.dot(
        a_ref[...], b_ref[...], preferred_element_type=jnp.float32
    )

    @pl.when(k == pl.num_programs(2) - 1)
    def _():
        res = acc_ref[...].astype(o_ref.dtype)
        # cat([v1, v1], dim=0): same tile stored to both halves of the
        # leading size-2 output axis (lane-dense, unmasked stores).
        o_ref[0] = res
        o_ref[1] = res


def _round_up(v, m):
    return ((v + m - 1) // m) * m


def _tile_and_pad(dim, pref, align):
    """Pick a tile (multiple of `align`) and the padded dim it divides.

    Large dims get the preferred tile (dim padded up to a multiple of it);
    small dims become a single aligned block.  Never returns an oversized
    full-dim block, so the VMEM footprint stays bounded."""
    if dim >= pref:
        tile = pref
    else:
        tile = _round_up(dim, align)
    return tile, _round_up(dim, tile)


def addmm_cat(x, mm1, mm2, *, tm_pref=512, tn_pref=512, tk_pref=512):
    M, N = x.shape
    K = mm1.shape[1]
    assert mm1.shape == (M, K) and mm2.shape == (K, N)

    # MXU-row-aligned tm when M is large enough; 8-sublane fallback for tiny M.
    tm_align = 128 if M >= 128 else 8
    tm, pM = _tile_and_pad(M, tm_pref, tm_align)   # sublane-aligned
    tn, pN = _tile_and_pad(N, tn_pref, 128)        # lane-aligned
    tk, pK = _tile_and_pad(K, tk_pref, 128)        # lane-aligned

    # Keep >= 2 parallel (M/N) blocks when the problem allows it, so the two
    # "parallel" grid axes can actually shard across both TensorCores on v7x.
    if (pM // tm) * (pN // tn) == 1:
        if tm >= 256:
            tm //= 2
        elif tn >= 256:
            tn //= 2

    # Zero-pad to tile multiples (zeros contribute nothing to the matmul;
    # padded rows/cols are sliced off the output below).
    if (pM, K) != (M, K) or pK != K or pN != N:
        x = jnp.pad(x, ((0, pM - M), (0, pN - N)))
        mm1 = jnp.pad(mm1, ((0, pM - M), (0, pK - K)))
        mm2 = jnp.pad(mm2, ((0, pK - K), (0, pN - N)))

    grid = (pM // tm, pN // tn, pK // tk)

    out = pl.pallas_call(
        addmm_cat_kernel,
        out_shape=jax.ShapeDtypeStruct((2, pM, pN), x.dtype),
        grid_spec=pltpu.PrefetchScalarGridSpec(
            num_scalar_prefetch=0,
            grid=grid,
            in_specs=[
                pl.BlockSpec((tm, tn), lambda i, j, k: (i, j)),   # x (bias)
                pl.BlockSpec((tm, tk), lambda i, j, k: (i, k)),   # mm1
                pl.BlockSpec((tk, tn), lambda i, j, k: (k, j)),   # mm2
            ],
            out_specs=pl.BlockSpec((2, tm, tn), lambda i, j, k: (0, i, j)),
            scratch_shapes=[pltpu.VMEM((tm, tn), jnp.float32)],
        ),
        compiler_params=pltpu.CompilerParams(
            dimension_semantics=("parallel", "parallel", "arbitrary"),
            # 512^3 f32 double-buffered is ~11-12 MiB; 48 MiB leaves headroom
            # everywhere and stays under v7x's 64 MiB physical VMEM per TC.
            vmem_limit_bytes=48 * 1024 * 1024,
        ),
    )(x, mm1, mm2)

    # Slice off padding, then (2, M, N) -> (2M, N): contiguous reshape,
    # semantically identical to torch.cat([v1, v1], dim=0).
    return out[:, :M, :N].reshape(2 * M, N)


def _check(M, K, N, seed):
    key = jax.random.PRNGKey(seed)
    kx, k1, k2 = jax.random.split(key, 3)
    x = jax.random.normal(kx, (M, N), dtype=jnp.float32)
    # self.mm1 / self.mm2 are undefined in the PyTorch __init__; shapes are
    # implied by torch.addmm, initialized deterministically here.
    mm1 = jax.random.normal(k1, (M, K), dtype=jnp.float32)
    mm2 = jax.random.normal(k2, (K, N), dtype=jnp.float32)

    out = addmm_cat(x, mm1, mm2)
    jax.block_until_ready(out)

    v1 = x + mm1 @ mm2
    ref = jnp.concatenate([v1, v1], axis=0)
    assert out.shape == (2 * M, N)
    assert jnp.allclose(out, ref, atol=1e-4, rtol=1e-4)


if __name__ == "__main__":
    # Tiny shape (original test case) -- exercises the small-block + padding path.
    _check(M=8, K=32, N=128, seed=0)
    # Multi-tile shape -- exercises the tiled grid, K reduction, accumulator
    # bias-init/finalize, the parallel-axis split, and the duplicate-store concat.
    _check(M=256, K=512, N=512, seed=0)
    # Non-divisible dims -- exercises the zero-pad + output-slice path.
    _check(M=100, K=300, N=200, seed=0)
    print("KERNEL_OK")
</pallas_src>

<mosaic_0001>
module attributes {stable_mosaic.version = 11 : i64} {
  func.func @addmm_cat_kernel(%arg0: i32, %arg1: i32, %arg2: i32, %arg3: memref<8x128xf32, #tpu.memory_space<vmem>>, %arg4: memref<8x128xf32, #tpu.memory_space<vmem>>, %arg5: memref<128x128xf32, #tpu.memory_space<vmem>>, %arg6: memref<2x8x128xf32, #tpu.memory_space<vmem>>, %arg7: memref<8x128xf32, #tpu.memory_space<vmem>>) attributes {dimension_semantics = [#tpu.dimension_semantics<parallel>, #tpu.dimension_semantics<parallel>, #tpu.dimension_semantics<arbitrary>], iteration_bounds = array<i64: 1, 1, 1>, scalar_prefetch = 0 : i64, scratch_operands = 1 : i64, tpu.core_type = #tpu.core_type<tc>, window_params = [{transform_indices = @transform_0, window_bounds = array<i64: 8, 128>}, {transform_indices = @transform_1, window_bounds = array<i64: 8, 128>}, {transform_indices = @transform_2, window_bounds = array<i64: 128, 128>}, {transform_indices = @transform_3, window_bounds = array<i64: 2, 8, 128>}]} {
    %c0_i32 = arith.constant 0 : i32
    %0 = arith.cmpi eq, %arg2, %c0_i32 : i32
    %1 = arith.extui %0 : i1 to i32
    %c0_i32_0 = arith.constant 0 : i32
    %2 = arith.cmpi ne, %1, %c0_i32_0 : i32
    scf.if %2 {
      %c0_10 = arith.constant 0 : index
      %c0_11 = arith.constant 0 : index
      %12 = vector.load %arg3[%c0_10, %c0_11] : memref<8x128xf32, #tpu.memory_space<vmem>>, vector<8x128xf32>
      %c0_12 = arith.constant 0 : index
      %c0_13 = arith.constant 0 : index
      %13 = vector.load %arg7[%c0_12, %c0_13] : memref<8x128xf32, #tpu.memory_space<vmem>>, vector<8x128xf32>
      tpu.vector_store %arg7[%c0_12, %c0_13], %12 {strides = array<i32>} : memref<8x128xf32, #tpu.memory_space<vmem>>, vector<8x128xf32>,
    } else {
    }
    %c0 = arith.constant 0 : index
    %c0_1 = arith.constant 0 : index
    %3 = vector.load %arg7[%c0, %c0_1] : memref<8x128xf32, #tpu.memory_space<vmem>>, vector<8x128xf32>
    %c0_2 = arith.constant 0 : index
    %c0_3 = arith.constant 0 : index
    %4 = vector.load %arg4[%c0_2, %c0_3] : memref<8x128xf32, #tpu.memory_space<vmem>>, vector<8x128xf32>
    %c0_4 = arith.constant 0 : index
    %c0_5 = arith.constant 0 : index
    %5 = vector.load %arg5[%c0_4, %c0_5] : memref<128x128xf32, #tpu.memory_space<vmem>>, vector<128x128xf32>
    %cst = arith.constant dense<0.000000e+00> : vector<8x128xf32>
    %6 = tpu.matmul %4, %5, %cst {dimension_numbers = #tpu.dot_dimension_numbers<[1], [0], [0], [1], [0, 0, 1, 1], [], []>} : vector<8x128xf32>, vector<128x128xf32>, vector<8x128xf32> -> vector<8x128xf32>
    %7 = arith.addf %3, %6 : vector<8x128xf32>
    %c0_6 = arith.constant 0 : index
    %c0_7 = arith.constant 0 : index
    %8 = vector.load %arg7[%c0_6, %c0_7] : memref<8x128xf32, #tpu.memory_space<vmem>>, vector<8x128xf32>
    tpu.vector_store %arg7[%c0_6, %c0_7], %7 {strides = array<i32>} : memref<8x128xf32, #tpu.memory_space<vmem>>, vector<8x128xf32>,
    %c0_i32_8 = arith.constant 0 : i32
    %9 = arith.cmpi eq, %arg2, %c0_i32_8 : i32
    %10 = arith.extui %9 : i1 to i32
    %c0_i32_9 = arith.constant 0 : i32
    %11 = arith.cmpi ne, %10, %c0_i32_9 : i32
    scf.if %11 {
      %c0_10 = arith.constant 0 : index
      %c0_11 = arith.constant 0 : index
      %12 = vector.load %arg7[%c0_10, %c0_11] : memref<8x128xf32, #tpu.memory_space<vmem>>, vector<8x128xf32>
      %c0_12 = arith.constant 0 : index
      %c0_13 = arith.constant 0 : index
      %c0_14 = arith.constant 0 : index
      %13 = vector.load %arg6[%c0_12, %c0_13, %c0_14] : memref<2x8x128xf32, #tpu.memory_space<vmem>>, vector<1x8x128xf32>
      %14 = vector.shape_cast %13 : vector<1x8x128xf32> to vector<8x128xf32>
      %15 = vector.shape_cast %12 : vector<8x128xf32> to vector<1x8x128xf32>
      tpu.vector_store %arg6[%c0_12, %c0_13, %c0_14], %15 {strides = array<i32>} : memref<2x8x128xf32, #tpu.memory_space<vmem>>, vector<1x8x128xf32>,
      %c1 = arith.constant 1 : index
      %c0_15 = arith.constant 0 : index
      %c0_16 = arith.constant 0 : index
      %16 = vector.load %arg6[%c1, %c0_15, %c0_16] : memref<2x8x128xf32, #tpu.memory_space<vmem>>, vector<1x8x128xf32>
      %17 = vector.shape_cast %16 : vector<1x8x128xf32> to vector<8x128xf32>
      %18 = vector.shape_cast %12 : vector<8x128xf32> to vector<1x8x128xf32>
      tpu.vector_store %arg6[%c1, %c0_15, %c0_16], %18 {strides = array<i32>} : memref<2x8x128xf32, #tpu.memory_space<vmem>>, vector<1x8x128xf32>,
    } else {
    }
    return
  }
  func.func @transform_0(%arg0: i32, %arg1: i32, %arg2: i32) -> (i32, i32) {
    %c0_i32 = arith.constant 0 : i32
    return %arg0, %arg1 : i32, i32
  }
  func.func @transform_1(%arg0: i32, %arg1: i32, %arg2: i32) -> (i32, i32) {
    %c0_i32 = arith.constant 0 : i32
    return %arg0, %arg2 : i32, i32
  }
  func.func @transform_2(%arg0: i32, %arg1: i32, %arg2: i32) -> (i32, i32) {
    %c0_i32 = arith.constant 0 : i32
    return %arg2, %arg1 : i32, i32
  }
  func.func @transform_3(%arg0: i32, %arg1: i32, %arg2: i32) -> (i32, i32, i32) {
    %c0_i32 = arith.constant 0 : i32
    %c0_i32_0 = arith.constant 0 : i32
    return %c0_i32, %arg0, %arg1 : i32, i32, i32
  }
}

</mosaic_0001>

<bundles_post_ra>
// kernel: tpu_custom_call.1
= control target key start
LH: loop header
LB: loop body
LE: loop exit
PB: predicated region body
PF: predicated region fallthrough
CT: control target
= control target key end

     0   :  { %8 = vsyncpa [#allocation4], 0  ;;  %s435_s0 = inlined_call_operand.hbm [shape: f32[8,128], index: 0, kind: input, shape index: {}]   ;;  %s436_s1 = inlined_call_operand.hbm [shape: f32[8,128], index: 1, kind: input, shape index: {}]   ;;  %s437_s2 = inlined_call_operand.hbm [shape: f32[128,128], index: 2, kind: input, shape index: {}]   ;;  %s438_s3 = inlined_call_operand.hbm [shape: f32[2,8,128], index: 3, kind: output, shape index: {}]  }
   0x1   :  { %9 = vsyncpa [#allocation7], 0 }
   0x2   :  { %10 = vsyncpa [#allocation5], 0  ;;  %s352_s12 = smov [#allocation6]   ;;  %s353_s14 = smov [#allocation3]  }
   0x3   :  { %s27_s13 = sshll.u32 %s352_s12, 4  ;;  %s17_s15 = sshll.u32 %s353_s14, 4  ;;  %s28_s13 = int_to_ptr.vmem [resolvable:$true] %s27_s13  ;;  %s18_s15 = int_to_ptr.vmem [resolvable:$true] %s17_s15 }
   0x4   :  { %s258_s18 = scalar_lea.hbm %s436_s1, 128 }
   0x5   :  { %p259_p0 = scmp.ne.s32.totalorder %s436_s1, %s258_s18  ;;  %p262_p1 = scmp.lt.u32.totalorder %s258_s18, %s436_s1 }
   0x7   :  { %p264_p2 = pnand %p262_p1, %p259_p0 }
   0x9   :  { %267 = shalt.err (!%p264_p2)
}
   0xa   :  { %s268_s23 = scalar_lea.vmem %s28_s13, 128  ;;  %p273_p4 = scmp.lt.s32.totalorder %s28_s13, %s28_s13 }
   0xb   :  { %p269_p3 = scmp.ne.s32.totalorder %s28_s13, %s268_s23  ;;  %p274_p5 = scmp.lt.s32.totalorder %s268_s23, %s268_s23 }
   0xd   :  { %p275_p6 = por %p274_p5, %p273_p4 }
   0xf   :  { %p276_p7 = pnand %p275_p6, %p269_p3 }
  0x11   :  { %279 = shalt.err (!%p276_p7)
}
  0x12   :  { %30 = dma.hbm_to_vmem [thread:$0]  %s436_s1, 128, %s28_s13, [#allocation7]  }
  0x13   :  { %s280_s28 = scalar_lea.hbm %s435_s0, 128 }
  0x14   :  { %p281_p8 = scmp.ne.s32.totalorder %s435_s0, %s280_s28  ;;  %p284_p9 = scmp.lt.u32.totalorder %s280_s28, %s435_s0 }
  0x16   :  { %p286_p10 = pnand %p284_p9, %p281_p8 }
  0x18   :  { %289 = shalt.err (!%p286_p10)
}
  0x19   :  { %s290_s6 = scalar_lea.vmem %s18_s15, 128  ;;  %p295_p12 = scmp.lt.s32.totalorder %s18_s15, %s18_s15 }
  0x1a   :  { %p291_p11 = scmp.ne.s32.totalorder %s18_s15, %s290_s6  ;;  %p296_p13 = scmp.lt.s32.totalorder %s290_s6, %s290_s6 }
  0x1c   :  { %p297_p0 = por %p296_p13, %p295_p12 }
  0x1e   :  { %p298_p1 = pnand %p297_p0, %p291_p11 }
  0x20   :  { %301 = shalt.err (!%p298_p1)
}
  0x21   :  { %20 = dma.hbm_to_vmem [thread:$0]  %s435_s0, 128, %s18_s15, [#allocation4]  }
  0x22   :  { %s354_s8 = smov [#allocation8]   ;;  %s302_s12 = scalar_lea.hbm %s437_s2, 2048 }
  0x23   :  { %s36_s9 = sshll.u32 %s354_s8, 4  ;;  %p303_p2 = scmp.ne.s32.totalorder %s437_s2, %s302_s12  ;;  %s37_s9 = int_to_ptr.vmem [resolvable:$true] %s36_s9 }
  0x24   :  { %p306_p3 = scmp.lt.u32.totalorder %s302_s12, %s437_s2 }
  0x26   :  { %p308_p4 = pnand %p306_p3, %p303_p2 }
  0x28   :  { %311 = shalt.err (!%p308_p4)
}
  0x29   :  { %s312_s18 = scalar_lea.vmem %s37_s9, 2048  ;;  %p317_p6 = scmp.lt.s32.totalorder %s37_s9, %s37_s9 }
  0x2a   :  { %p313_p5 = scmp.ne.s32.totalorder %s37_s9, %s312_s18  ;;  %p318_p7 = scmp.lt.s32.totalorder %s312_s18, %s312_s18 }
  0x2c   :  { %p319_p8 = por %p318_p7, %p317_p6 }
  0x2e   :  { %p320_p9 = pnand %p319_p8, %p313_p5 }
  0x30   :  { %323 = shalt.err (!%p320_p9)
}
  0x31   :  { %s355_s0 = smov 128   ;;  %s356_s15 = smov 8  }
  0x32   :  { %42 = dma.hbm_to_vmem [thread:$0]  %s437_s2, 2048, %s37_s9, [#allocation7], %s355_s0, %s355_s0, %s356_s15  }
  0x33   :  { %346 = dma.done.wait [#allocation4], 128  }
  0x34   :  { %347 = vsyncadd [#allocation4], 4294967168 }
  0x35   :  { %348 = dma.done.wait [#allocation7], 2176  }
  0x36   :  { %349 = vsyncadd [#allocation7], 4294965120  ;;  %v357_v0 = vmov 0.0|0.0   ;;  %vm358_vm0 = vmmov 0   ;;  %v359_v1 = vmov 0.0   ;;  %v60_v2 = vld [vmem:[#allocation8] sm:$0xff] }
  0x37   :  { %225 = vmatprep.subr.bf16.mxu0 %v357_v0  ;;  %222 = vmatprep.mubr.msk.f32.mxu0 %vm358_vm0, %v359_v1  ;;  %v61_v3 = vld [vmem:[#allocation8 + $0x8] sm:$0xff]  ;;  %v62_v4 = vld [vmem:[#allocation8 + $0x10] sm:$0xff]  ;;  %v63_v6 = vld [vmem:[#allocation8 + $0x18] sm:$0xff]  ;;  %s360_s2 = smov [#allocation9]  }
  0x38   :  { %v226_v5 = vpack.c.bf16 %v61_v3, %v60_v2  ;;  %v229_v7 = vpack.c.bf16 %v63_v6, %v62_v4  ;;  %v64_v8 = vld [vmem:[#allocation8 + $0x20] sm:$0xff]  ;;  %v65_v9 = vld [vmem:[#allocation8 + $0x28] sm:$0xff]  ;;  %v66_v11 = vld [vmem:[#allocation8 + $0x30] sm:$0xff]  ;;  %s160_s21 = sshll.u32 %s360_s2, 4  ;;  %s161_s21 = int_to_ptr.vmem [resolvable:$true] %s160_s21 }
  0x39   :  { %v232_v10 = vpack.c.bf16 %v65_v9, %v64_v8  ;;  %v67_v12 = vld [vmem:[#allocation8 + $0x38] sm:$0xff]  ;;  %v68_v14 = vld [vmem:[#allocation8 + $0x40] sm:$0xff]  ;;  %v69_v15 = vld [vmem:[#allocation8 + $0x48] sm:$0xff]  ;;  %s324_s22 = scalar_lea.vmem %s161_s21, 256  ;;  %p329_p11 = scmp.lt.s32.totalorder %s161_s21, %s161_s21 }
  0x3a   :  { %227 = vmatpush3.bf16.msra.mxu0 %v226_v5  ;;  %v235_v13 = vpack.c.bf16 %v67_v12, %v66_v11  ;;  %v238_v16 = vpack.c.bf16 %v69_v15, %v68_v14  ;;  %v70_v17 = vld [vmem:[#allocation8 + $0x50] sm:$0xff]  ;;  %v71_v18 = vld [vmem:[#allocation8 + $0x58] sm:$0xff]  ;;  %v72_v20 = vld [vmem:[#allocation8 + $0x60] sm:$0xff]  ;;  %p325_p10 = scmp.ne.s32.totalorder %s161_s21, %s324_s22  ;;  %p330_p12 = scmp.lt.s32.totalorder %s324_s22, %s324_s22 }
  0x3b   :  { %228 = vmatprep.subr.bf16.mxu0 %v357_v0  ;;  %v241_v19 = vpack.c.bf16 %v71_v18, %v70_v17  ;;  %v73_v21 = vld [vmem:[#allocation8 + $0x68] sm:$0xff]  ;;  %v74_v23 = vld [vmem:[#allocation8 + $0x70] sm:$0xff]  ;;  %v75_v24 = vld [vmem:[#allocation8 + $0x78] sm:$0xff] }
  0x3c   :  { %v244_v22 = vpack.c.bf16 %v73_v21, %v72_v20  ;;  %v247_v25 = vpack.c.bf16 %v75_v24, %v74_v23  ;;  %v59_v26 = vld [vmem:[#allocation6] sm:$0xff]  ;;  %v56_v27 = vld [vmem:[#allocation3] sm:$0xff]  ;;  %p331_p13 = por %p330_p12, %p329_p11 }
  0x3e   :  { %230 = vmatpush3.bf16.msra.mxu0 %v229_v7  ;;  %p332_p0 = pnand %p331_p13, %p325_p10 }
  0x3f   :  { %231 = vmatprep.subr.bf16.mxu0 %v357_v0 }
  0x42   :  { %233 = vmatpush3.bf16.msra.mxu0 %v232_v10 }
  0x43   :  { %234 = vmatprep.subr.bf16.mxu0 %v357_v0 }
  0x46   :  { %236 = vmatpush3.bf16.msra.mxu0 %v235_v13 }
  0x47   :  { %237 = vmatprep.subr.bf16.mxu0 %v357_v0 }
  0x4a   :  { %239 = vmatpush3.bf16.msra.mxu0 %v238_v16 }
  0x4b   :  { %240 = vmatprep.subr.bf16.mxu0 %v357_v0 }
  0x4e   :  { %242 = vmatpush3.bf16.msra.mxu0 %v241_v19 }
  0x4f   :  { %243 = vmatprep.subr.bf16.mxu0 %v357_v0 }
  0x52   :  { %245 = vmatpush3.bf16.msra.mxu0 %v244_v22 }
  0x53   :  { %246 = vmatprep.subr.bf16.mxu0 %v357_v0 }
  0x56   :  { %248 = vmatpush3.bf16.msra.mxu0 %v247_v25 }
  0x59   :  { %223 = vmatmul.mubr.f32.vlgmr.msra.gmra.mrb[0].mxu0 %v59_v26 }
 0x12c   :  { %v142_v28 = vpop.f32.mrb[0].mxu0 }
 0x12d   :  { %v146_v29 = vadd.f32 %v142_v28, %v56_v27  ;;  %v224_v30 = vpop.f32.mrb[1].mxu0 }
 0x12f   :  { %152 = vst [vmem:[#allocation9] sm:$0xff] %v146_v29  ;;  %154 = vst [vmem:[#allocation9 + $0x8] sm:$0xff] %v146_v29 }
 0x130   :  { %335 = shalt.err (!%p332_p0)
}
 0x131   :  { %s336_s25 = scalar_lea.hbm %s438_s3, 256 }
 0x132   :  { %p337_p1 = scmp.ne.s32.totalorder %s438_s3, %s336_s25  ;;  %p340_p2 = scmp.lt.u32.totalorder %s336_s25, %s438_s3 }
 0x134   :  { %p342_p3 = pnand %p340_p2, %p337_p1 }
 0x136   :  { %345 = shalt.err (!%p342_p3)
}
 0x137   :  { %166 = dma.vmem_to_hbm [thread:$0]  %s161_s21, 256, %s438_s3, [#allocation5], %s355_s0, %s355_s0, %s356_s15  }
 0x138   :  { %350 = dma.done.wait [#allocation5], 256  }
 0x139   :  { %351 = vsyncadd [#allocation5], 4294967040 }
 0x13a   :  { %170 = vsyncpa [#allocation4], 1 }
 0x13b   :  { %171 = vsyncpa [#allocation7], 1 }
 0x13c   :  { %172 = vsyncpa [#allocation5], 1 }

</bundles_post_ra>
